<compile_context>
chip_gen: v7x
topology: tpu7x:2x2x1
jax: 0.10.0
libtpu: 0.0.40
codegen_flags: <defaults>
</compile_context>

<pallas_src>
import jax
import jax.numpy as jnp
from jax import lax
from jax.experimental import pallas as pl
from jax.experimental.pallas import tpu as pltpu  # noqa: F401  (TPU backend assumed)

# Small, forward-consistent shapes:
#   batch N=2, events T=8, context dim 64, spatial dim 2, hidden dim 32.
N, T, CTX, D, HS = 2, 8, 64, 2, 32
NT = N * T                  # flattened (batch, event) rows
LANES = 128                 # vreg / MXU lane width
ROWS = 2 * NT               # fused LHS rows: [time rows ; space rows]
KPAD = LANES                # contraction dim: 64 ctx + 1 bias, zero-padded to 128


def _fused_kernel(x_ref, w_ref, aux_ref, out_ref):
    # One MXU matmul covers both Linear layers (biases folded via the ones
    # column at k == CTX):
    #   rows 0:NT   (time_context rows):  column 0      = Linear(64,1)  + b_t
    #   rows NT:2NT (space_context rows): columns 32:64 = Linear(64,32) + b_s
    y = jnp.dot(x_ref[...], w_ref[...],
                preferred_element_type=jnp.float32)            # (ROWS, 128)

    lane = lax.broadcasted_iota(jnp.int32, (NT, LANES), 1)

    # ---- time path: intensities -> global [9, 11] rescale -> masked log-sum ----
    inten = y[0:NT, 0:1]                                        # (NT, 1)
    mn = jnp.min(inten)
    mx = jnp.max(inten)
    inten = 9.0 + (inten - mn) / (mx - mn) * 2.0

    aux = aux_ref[...]                                          # (NT, NT + 1)
    p_mask = aux[:, 0:NT]           # segment-masked summation matrix (NT, NT)
    lam = aux[:, NT:NT + 1]         # Lambda compensator, broadcast per row (NT, 1)

    inten_b = jnp.broadcast_to(inten, (NT, LANES))              # lane-dense
    log_b = jnp.log(inten_b + 1e-8)                             # EUP, 2 vregs
    # time_loglik[n] replicated across all lanes / all rows of its segment:
    tll_b = jnp.dot(p_mask, log_b,
                    preferred_element_type=jnp.float32) - lam   # (NT, 128)

    # ---- space path: hidden_states -> global [-1, 1] rescale ----
    hs_raw = y[NT:ROWS, :]                                      # (NT, 128); real cols 32:64
    valid = jnp.logical_and(lane >= HS, lane < 2 * HS)
    mn2 = jnp.min(jnp.where(valid, hs_raw, jnp.inf))
    mx2 = jnp.max(jnp.where(valid, hs_raw, -jnp.inf))
    hs = -1.0 + (hs_raw - mn2) / (mx2 - mn2) * 2.0              # wrapper slices cols 32:64

    # ---- lane-dense packed output: two unmasked full-tile stores ----
    # rows 0:NT   : lane 0 = intensities, lane 1 = time_loglik (read at row n*T)
    # rows NT:2NT : lanes 32:64 = hidden_states
    misc = jnp.where(lane == 1, tll_b, inten_b)
    out_ref[0:NT, :] = misc
    out_ref[NT:ROWS, :] = hs


@jax.jit
def shared_hidden_state_forward(event_times, spatial_locations, input_mask,
                                time_context, space_context, t0, t1, params):
    """Mirrors SharedHiddenStateSpatiotemporalModel.forward.

    Returns (intensities, space_loglik, time_loglik, hidden_states), where
    hidden_states is the normalized aux_state that would feed the spatial CNF.
    """
    wt, bt, ws, bs = params

    # TODO(synk): temporal_model.integrate_lambda is an adaptive ODE solve over
    # a NeuralPointProcess; stubbed with a unit-intensity compensator
    # Lambda = t1 - t0 (its intensities/hidden_states outputs are overwritten
    # by the context processors in the original forward anyway).
    Lambda = jnp.broadcast_to(jnp.asarray(t1 - t0, jnp.float32), (N,))

    tc_flat = time_context.astype(jnp.float32).reshape(NT, CTX)
    sc_flat = space_context.astype(jnp.float32).reshape(NT, CTX)

    # Fused lane-dense LHS (ROWS, 128): [time rows ; space rows], ones column at
    # k = CTX (bias), rest zero-padded.
    x = jnp.concatenate([tc_flat, sc_flat], axis=0)                      # (ROWS, 64)
    x_pad = jnp.concatenate(
        [x,
         jnp.ones((ROWS, 1), jnp.float32),
         jnp.zeros((ROWS, KPAD - CTX - 1), jnp.float32)], axis=1)        # (ROWS, 128)

    # Fused lane-dense RHS (128, 128): col 0 = time weights + bias,
    # cols 32:64 = space weights + bias.
    w_pad = jnp.zeros((KPAD, LANES), jnp.float32)
    w_pad = w_pad.at[0:CTX, 0].set(wt.astype(jnp.float32))
    w_pad = w_pad.at[CTX, 0].set(bt.astype(jnp.float32)[0])
    w_pad = w_pad.at[0:CTX, HS:2 * HS].set(ws.astype(jnp.float32))
    w_pad = w_pad.at[CTX, HS:2 * HS].set(bs.astype(jnp.float32))

    # aux (NT, NT+1): cols 0:NT = P with P[r, r'] = input_mask[r'] if rows r, r'
    # belong to the same batch element (so P @ log(intensities) realizes the
    # per-batch masked log-sum with no in-kernel reshape); col NT = Lambda
    # broadcast to every row of its segment.
    r = jnp.arange(NT)
    same_batch = (r[:, None] // T) == (r[None, :] // T)
    p_mask = jnp.where(same_batch,
                       input_mask.astype(jnp.float32).reshape(1, NT), 0.0)
    lam_full = jnp.repeat(Lambda, T).reshape(NT, 1)
    aux = jnp.concatenate([p_mask, lam_full], axis=1)                    # (NT, 17)

    # TODO(synk): for large N*T this single-block kernel should become an
    # NT-tiled "parallel" grid with a two-pass (reduce-then-normalize) global
    # min/max so it fits v7x's smaller VMEM and uses both TensorCores.
    out = pl.pallas_call(
        _fused_kernel,
        out_shape=jax.ShapeDtypeStruct((ROWS, LANES), jnp.float32),
    )(x_pad, w_pad, aux)

    intensities = out[0:NT, 0].reshape(N, T)
    time_loglik = out[0:NT, 1].reshape(N, T)[:, 0]
    hidden_states = out[NT:ROWS, HS:2 * HS].reshape(N, T, HS)

    # TODO(synk): spatial_model.logprob is abstract (built by the missing
    # _build_spatial_model CNF); no Pallas equivalent — placeholder zeros.
    space_loglik = jnp.zeros((N,), jnp.float32)

    return intensities, space_loglik, time_loglik, hidden_states


def _reference_forward(input_mask, time_context, space_context, t0, t1, params):
    """Pure-JAX reference for the concrete math (same Lambda stub)."""
    wt, bt, ws, bs = params
    Lambda = jnp.broadcast_to(jnp.asarray(t1 - t0, jnp.float32), (N,))

    inten = jnp.einsum("ntc,c->nt", time_context, wt,
                       precision=lax.Precision.HIGHEST) + bt[0]
    mn, mx = jnp.min(inten), jnp.max(inten)
    inten = 9.0 + (inten - mn) / (mx - mn) * 2.0
    tll = jnp.sum(jnp.log(inten + 1e-8) * input_mask, axis=1) - Lambda

    hs = jnp.einsum("ntc,ch->nth", space_context, ws,
                    precision=lax.Precision.HIGHEST) + bs
    mn2, mx2 = jnp.min(hs), jnp.max(hs)
    hs = -1.0 + (hs - mn2) / (mx2 - mn2) * 2.0
    return inten, tll, hs


if __name__ == "__main__":
    key = jax.random.PRNGKey(0)
    ks = jax.random.split(key, 9)

    # Deterministic parameter init (Linear(64,1) and Linear(64,32) of the module).
    wt = jax.random.normal(ks[0], (CTX,), jnp.float32) * 0.1    # time_context_processor.weight^T
    bt = jax.random.normal(ks[1], (1,), jnp.float32) * 0.1
    ws = jax.random.normal(ks[2], (CTX, HS), jnp.float32) * 0.1  # space_context_processor.weight^T
    bs = jax.random.normal(ks[3], (HS,), jnp.float32) * 0.1
    params = (wt, bt, ws, bs)

    # Forward-pass inputs.
    event_times = jnp.sort(jax.random.uniform(ks[4], (N, T), jnp.float32) * 10.0, axis=1)
    spatial_locations = jax.random.normal(ks[5], (N, T, D), jnp.float32)
    input_mask = jnp.concatenate(
        [jnp.ones((N, T - 2), jnp.float32), jnp.zeros((N, 2), jnp.float32)], axis=1)
    time_context = jax.random.normal(ks[6], (N, T, CTX), jnp.float32)
    space_context = jax.random.normal(ks[7], (N, T, CTX), jnp.float32)
    t0, t1 = 0.0, 10.0

    intensities, space_loglik, time_loglik, hidden_states = jax.block_until_ready(
        shared_hidden_state_forward(event_times, spatial_locations, input_mask,
                                    time_context, space_context, t0, t1, params))

    ref_inten, ref_tll, ref_hs = _reference_forward(
        input_mask, time_context, space_context, t0, t1, params)

    assert intensities.shape == (N, T)
    assert time_loglik.shape == (N,)
    assert space_loglik.shape == (N,)
    assert hidden_states.shape == (N, T, HS)
    assert jnp.allclose(intensities, ref_inten, rtol=1e-4, atol=1e-4)
    assert jnp.allclose(time_loglik, ref_tll, rtol=1e-4, atol=1e-4)
    assert jnp.allclose(hidden_states, ref_hs, rtol=1e-4, atol=1e-4)

    print("KERNEL_OK")
</pallas_src>

<mosaic_0001>
module attributes {stable_mosaic.version = 11 : i64} {
  func.func @_fused_kernel(%arg0: memref<32x128xf32, #tpu.memory_space<vmem>>, %arg1: memref<128x128xf32, #tpu.memory_space<vmem>>, %arg2: memref<16x17xf32, #tpu.memory_space<vmem>>, %arg3: memref<32x128xf32, #tpu.memory_space<vmem>>) attributes {dimension_semantics = [], scalar_prefetch = 0 : i64, scratch_operands = 0 : i64, tpu.core_type = #tpu.core_type<tc>} {
    %c0 = arith.constant 0 : index
    %c0_0 = arith.constant 0 : index
    %0 = vector.load %arg0[%c0, %c0_0] : memref<32x128xf32, #tpu.memory_space<vmem>>, vector<32x128xf32>
    %c0_1 = arith.constant 0 : index
    %c0_2 = arith.constant 0 : index
    %1 = vector.load %arg1[%c0_1, %c0_2] : memref<128x128xf32, #tpu.memory_space<vmem>>, vector<128x128xf32>
    %cst = arith.constant dense<0.000000e+00> : vector<32x128xf32>
    %2 = tpu.matmul %0, %1, %cst {dimension_numbers = #tpu.dot_dimension_numbers<[1], [0], [0], [1], [0, 0, 1, 1], [], []>} : vector<32x128xf32>, vector<128x128xf32>, vector<32x128xf32> -> vector<32x128xf32>
    %3 = tpu.iota {dimensions = array<i32: 1>} : vector<16x128xi32>
    %4 = vector.extract_strided_slice %2 {offsets = [0, 0], sizes = [16, 1], strides = [1, 1]} : vector<32x128xf32> to vector<16x1xf32>
    %5 = vector.shape_cast %4 : vector<16x1xf32> to vector<1x16x1xf32>
    %cst_3 = arith.constant dense<0x7F800000> : vector<1xf32>
    %6 = vector.multi_reduction <minimumf>, %5, %cst_3 [1, 2] : vector<1x16x1xf32> to vector<1xf32>
    %7 = vector.shape_cast %6 : vector<1xf32> to vector<1x1x1xf32>
    %8 = vector.extract %7[0, 0, 0] : f32 from vector<1x1x1xf32>
    %9 = vector.shape_cast %4 : vector<16x1xf32> to vector<1x16x1xf32>
    %cst_4 = arith.constant dense<0xFF800000> : vector<1xf32>
    %10 = vector.multi_reduction <maximumf>, %9, %cst_4 [1, 2] : vector<1x16x1xf32> to vector<1xf32>
    %11 = vector.shape_cast %10 : vector<1xf32> to vector<1x1x1xf32>
    %12 = vector.extract %11[0, 0, 0] : f32 from vector<1x1x1xf32>
    %13 = vector.broadcast %8 : f32 to vector<16x1xf32>
    %14 = arith.subf %4, %13 : vector<16x1xf32>
    %15 = arith.subf %12, %8 : f32
    %16 = vector.broadcast %15 : f32 to vector<16x1xf32>
    %17 = arith.divf %14, %16 : vector<16x1xf32>
    %cst_5 = arith.constant 2.000000e+00 : f32
    %18 = vector.broadcast %cst_5 : f32 to vector<16x1xf32>
    %19 = arith.mulf %17, %18 : vector<16x1xf32>
    %cst_6 = arith.constant 9.000000e+00 : f32
    %20 = vector.broadcast %cst_6 : f32 to vector<16x1xf32>
    %21 = arith.addf %20, %19 : vector<16x1xf32>
    %c0_7 = arith.constant 0 : index
    %c0_8 = arith.constant 0 : index
    %22 = vector.load %arg2[%c0_7, %c0_8] : memref<16x17xf32, #tpu.memory_space<vmem>>, vector<16x17xf32>
    %23 = vector.extract_strided_slice %22 {offsets = [0, 0], sizes = [16, 16], strides = [1, 1]} : vector<16x17xf32> to vector<16x16xf32>
    %24 = vector.extract_strided_slice %22 {offsets = [0, 16], sizes = [16, 1], strides = [1, 1]} : vector<16x17xf32> to vector<16x1xf32>
    %25 = vector.shape_cast %21 : vector<16x1xf32> to vector<16x1xf32>
    %26 = vector.broadcast %25 : vector<16x1xf32> to vector<16x128xf32>
    %cst_9 = arith.constant 9.99999993E-9 : f32
    %27 = vector.broadcast %cst_9 : f32 to vector<16x128xf32>
    %28 = arith.addf %26, %27 : vector<16x128xf32>
    %29 = math.log %28 : vector<16x128xf32>
    %cst_10 = arith.constant dense<0.000000e+00> : vector<16x128xf32>
    %30 = tpu.matmul %23, %29, %cst_10 {dimension_numbers = #tpu.dot_dimension_numbers<[1], [0], [0], [1], [0, 0, 1, 1], [], []>} : vector<16x16xf32>, vector<16x128xf32>, vector<16x128xf32> -> vector<16x128xf32>
    %31 = vector.broadcast %24 : vector<16x1xf32> to vector<16x128xf32>
    %32 = arith.subf %30, %31 : vector<16x128xf32>
    %33 = vector.extract_strided_slice %2 {offsets = [16, 0], sizes = [16, 128], strides = [1, 1]} : vector<32x128xf32> to vector<16x128xf32>
    %c32_i32 = arith.constant 32 : i32
    %34 = vector.broadcast %c32_i32 : i32 to vector<16x128xi32>
    %35 = arith.cmpi sge, %3, %34 : vector<16x128xi32>
    %c64_i32 = arith.constant 64 : i32
    %36 = vector.broadcast %c64_i32 : i32 to vector<16x128xi32>
    %37 = arith.cmpi slt, %3, %36 : vector<16x128xi32>
    %38 = arith.andi %35, %37 : vector<16x128xi1>
    %cst_11 = arith.constant 0x7F800000 : f32
    %39 = vector.broadcast %cst_11 : f32 to vector<16x128xf32>
    %40 = arith.select %38, %33, %39 : vector<16x128xi1>, vector<16x128xf32>
    %41 = vector.shape_cast %40 : vector<16x128xf32> to vector<1x16x128xf32>
    %cst_12 = arith.constant dense<0x7F800000> : vector<1xf32>
    %42 = vector.multi_reduction <minimumf>, %41, %cst_12 [1, 2] : vector<1x16x128xf32> to vector<1xf32>
    %43 = vector.shape_cast %42 : vector<1xf32> to vector<1x1x1xf32>
    %44 = vector.extract %43[0, 0, 0] : f32 from vector<1x1x1xf32>
    %cst_13 = arith.constant 0xFF800000 : f32
    %45 = vector.broadcast %cst_13 : f32 to vector<16x128xf32>
    %46 = arith.select %38, %33, %45 : vector<16x128xi1>, vector<16x128xf32>
    %47 = vector.shape_cast %46 : vector<16x128xf32> to vector<1x16x128xf32>
    %cst_14 = arith.constant dense<0xFF800000> : vector<1xf32>
    %48 = vector.multi_reduction <maximumf>, %47, %cst_14 [1, 2] : vector<1x16x128xf32> to vector<1xf32>
    %49 = vector.shape_cast %48 : vector<1xf32> to vector<1x1x1xf32>
    %50 = vector.extract %49[0, 0, 0] : f32 from vector<1x1x1xf32>
    %51 = vector.broadcast %44 : f32 to vector<16x128xf32>
    %52 = arith.subf %33, %51 : vector<16x128xf32>
    %53 = arith.subf %50, %44 : f32
    %54 = vector.broadcast %53 : f32 to vector<16x128xf32>
    %55 = arith.divf %52, %54 : vector<16x128xf32>
    %cst_15 = arith.constant 2.000000e+00 : f32
    %56 = vector.broadcast %cst_15 : f32 to vector<16x128xf32>
    %57 = arith.mulf %55, %56 : vector<16x128xf32>
    %cst_16 = arith.constant -1.000000e+00 : f32
    %58 = vector.broadcast %cst_16 : f32 to vector<16x128xf32>
    %59 = arith.addf %58, %57 : vector<16x128xf32>
    %c1_i32 = arith.constant 1 : i32
    %60 = vector.broadcast %c1_i32 : i32 to vector<16x128xi32>
    %61 = arith.cmpi eq, %3, %60 : vector<16x128xi32>
    %62 = arith.select %61, %32, %26 : vector<16x128xi1>, vector<16x128xf32>
    %c0_17 = arith.constant 0 : index
    %c0_18 = arith.constant 0 : index
    %63 = vector.load %arg3[%c0_17, %c0_18] : memref<32x128xf32, #tpu.memory_space<vmem>>, vector<16x128xf32>
    tpu.vector_store %arg3[%c0_17, %c0_18], %62 {strides = array<i32>} : memref<32x128xf32, #tpu.memory_space<vmem>>, vector<16x128xf32>,
    %c16 = arith.constant 16 : index
    %c0_19 = arith.constant 0 : index
    %64 = vector.load %arg3[%c16, %c0_19] : memref<32x128xf32, #tpu.memory_space<vmem>>, vector<16x128xf32>
    tpu.vector_store %arg3[%c16, %c0_19], %59 {strides = array<i32>} : memref<32x128xf32, #tpu.memory_space<vmem>>, vector<16x128xf32>,
    return
  }
}

</mosaic_0001>

<bundles_post_ra>
// kernel: squeeze.6
= control target key start
LH: loop header
LB: loop body
LE: loop exit
PB: predicated region body
PF: predicated region fallthrough
CT: control target
= control target key end

     0   :  { %vm7_vm0 = vcmask 64512   ;;  %s39_s0 = inlined_call_operand.vmem [shape: f32[16], index: 0, kind: input, shape index: {}]   ;;  %s40_s1 = inlined_call_operand.vmem [shape: f32[2,8], index: 1, kind: output, shape index: {}]  }
   0x1   :  { %v4_v0 = vld [vmem:[%s39_s0] sm:$0x1]  ;;  %s22_s0 = smov 120  }
   0x2   :  { %5 = vst [vmem:[#allocation1] sm:$0x1] %v4_v0 }
   0x9   :  { %v9_v1 = vld [vmem:[#allocation1] sm:$0x1]  }
   0xa   :  { %v6_v2 = vld [vmem:[#allocation1] sm:$0x1]   ;;  %10 = vrot.lane.b32.xlu0 %v9_v1, %s22_s0 }
   0xb   :  { %8 = vst.msk [vmem:[#allocation0] sm:$0x1] %vm7_vm0, %v6_v2  }
  0x7c   :  { %v11_v3 = vpop.permute.xlu0 %10  }
  0x7d   :  { %14 = vst.msk [vmem:[#allocation0 + $0x1] sm:$0x1] %vm7_vm0, %v11_v3  }
  0x84   :  { %v18_v4 = vld [vmem:[#allocation0] sm:$0x3] }
  0x85   :  { %20 = vst [vmem:[%s40_s1] sm:$0x3] %v18_v4 }

// kernel: squeeze.5
= control target key start
LH: loop header
LB: loop body
LE: loop exit
PB: predicated region body
PF: predicated region fallthrough
CT: control target
= control target key end

     0   :  { %s85_s0 = inlined_call_operand.vmem [shape: f32[16], index: 0, kind: input, shape index: {}]   ;;  %s86_s1 = inlined_call_operand.hbm [shape: f32[2,8], index: 1, kind: output, shape index: {}]  }
   0x1   :  { %v5_v0 = vld [vmem:[%s85_s0] sm:$0x1] }
   0x2   :  { %2 = vsyncpa [#allocation1], 0  ;;  %6 = vst [vmem:[#allocation3] sm:$0x1] %v5_v0  ;;  %vm8_vm0 = vcmask 64512   ;;  %s58_s0 = smov 120  }
   0x3   :  { %s59_s8 = smov [#allocation0]  }
   0x4   :  { %s26_s9 = sshll.u32 %s59_s8, 4  ;;  %s27_s9 = int_to_ptr.vmem [resolvable:$true] %s26_s9 }
   0x5   :  { %s34_s10 = scalar_lea.vmem %s27_s9, 32  ;;  %p39_p1 = scmp.lt.s32.totalorder %s27_s9, %s27_s9 }
   0x6   :  { %p35_p0 = scmp.ne.s32.totalorder %s27_s9, %s34_s10  ;;  %p40_p2 = scmp.lt.s32.totalorder %s34_s10, %s34_s10 }
   0x8   :  { %p41_p3 = por %p40_p2, %p39_p1 }
   0x9   :  { %v10_v1 = vld [vmem:[#allocation3] sm:$0x1]  }
   0xa   :  { %v7_v2 = vld [vmem:[#allocation3] sm:$0x1]   ;;  %11 = vrot.lane.b32.xlu0 %v10_v1, %s58_s0  ;;  %p42_p4 = pnand %p41_p3, %p35_p0 }
   0xb   :  { %9 = vst.msk [vmem:[#allocation2] sm:$0x1] %vm8_vm0, %v7_v2  }
  0x7c   :  { %v12_v3 = vpop.permute.xlu0 %11  }
  0x7d   :  { %15 = vst.msk [vmem:[#allocation2 + $0x1] sm:$0x1] %vm8_vm0, %v12_v3  }
  0x84   :  { %v19_v4 = vld [vmem:[#allocation2] sm:$0x3] }
  0x85   :  { %21 = vst [vmem:[#allocation0] sm:$0x3] %v19_v4 }
  0x86   :  { %45 = shalt.err (!%p42_p4)
}
  0x87   :  { %s46_s13 = scalar_lea.hbm %s86_s1, 32 }
  0x88   :  { %p47_p5 = scmp.ne.s32.totalorder %s86_s1, %s46_s13  ;;  %p50_p6 = scmp.lt.u32.totalorder %s46_s13, %s86_s1 }
  0x8a   :  { %p52_p7 = pnand %p50_p6, %p47_p5 }
  0x8c   :  { %55 = shalt.err (!%p52_p7)
}
  0x8d   :  { %29 = dma.vmem_to_hbm [thread:$0]  %s27_s9, 32, %s86_s1, [#allocation1]  }
  0x8e   :  { %56 = dma.done.wait [#allocation1], 32  }
  0x8f   :  { %57 = vsyncadd [#allocation1], 4294967264 }
  0x90   :  { %31 = vsyncpa [#allocation1], 1 }

// kernel: shared_hidden_state_forward.1
= control target key start
LH: loop header
LB: loop body
LE: loop exit
PB: predicated region body
PF: predicated region fallthrough
CT: control target
= control target key end

     0   :  { %vm121_vm0 = vcmask 7168   ;;  %v119_v36 = vlaneseq  ;;  %v446_v43 = vmov 0   ;;  %vm176_vm4 = vcmask 130048   ;;  %s563_s1 = inlined_call_operand.vmem [shape: f32[128,128], index: 1, kind: input, shape index: {}]   ;;  %s564_s0 = inlined_call_operand.vmem [shape: f32[32,128], index: 0, kind: input, shape index: {}]   ;;  %s565_s2 = inlined_call_operand.vmem [shape: f32[16,17], index: 2, kind: input, shape index: {}]   ;;  %s566_s3 = inlined_call_operand.vmem [shape: f32[32,128], index: 3, kind: output, shape index: {}]  }
   0x1   :  { %v18_v0 = vld [vmem:[%s563_s1] sm:$0xff]  ;;  %v19_v1 = vld [vmem:[%s563_s1 + $0x8] sm:$0xff]  ;;  %v20_v2 = vld [vmem:[%s563_s1 + $0x10] sm:$0xff]  ;;  %435 = vset.pattern.permute.xlu1 %v446_v43 }
   0x2   :  { %v389_v3 = vpack.c.bf16 %v19_v1, %v18_v0  ;;  %v21_v4 = vld [vmem:[%s563_s1 + $0x18] sm:$0xff]  ;;  %v22_v6 = vld [vmem:[%s563_s1 + $0x20] sm:$0xff]  ;;  %v23_v7 = vld [vmem:[%s563_s1 + $0x28] sm:$0xff]  ;;  %v528_v37 = vand.u32 127, %v119_v36 }
   0x3   :  { %v393_v5 = vpack.c.bf16 %v21_v4, %v20_v2  ;;  %v397_v8 = vpack.c.bf16 %v23_v7, %v22_v6  ;;  %v14_v9 = vld [vmem:[%s564_s0] sm:$0xff]  ;;  %v24_v10 = vld [vmem:[%s563_s1 + $0x30] sm:$0xff]  ;;  %v25_v11 = vld [vmem:[%s563_s1 + $0x38] sm:$0xff] }
   0x4   :  { %390 = vmatprep.subr.bf16.mxu0 %v389_v3  ;;  %376 = vmatprep.mubr.f32.mxu0 %v14_v9  ;;  %v401_v12 = vpack.c.bf16 %v25_v11, %v24_v10  ;;  %v26_v13 = vld [vmem:[%s563_s1 + $0x40] sm:$0xff]  ;;  %v27_v14 = vld [vmem:[%s563_s1 + $0x48] sm:$0xff]  ;;  %v28_v16 = vld [vmem:[%s563_s1 + $0x50] sm:$0xff]  ;;  %vm268_vm1 = vcmp.ge.s32.totalorder %v528_v37, 32  ;;  %vm269_vm2 = vcmp.lt.s32.totalorder %v528_v37, 64  ;;  %vm307_vm5 = vcmp.eq.s32.totalorder %v528_v37, 1 }
   0x5   :  { %392 = vmatpush3.bf16.msra.mxu0 %v389_v3  ;;  %v405_v15 = vpack.c.bf16 %v27_v14, %v26_v13  ;;  %v29_v17 = vld [vmem:[%s563_s1 + $0x58] sm:$0xff]  ;;  %v30_v19 = vld [vmem:[%s563_s1 + $0x60] sm:$0xff]  ;;  %v31_v20 = vld [vmem:[%s563_s1 + $0x68] sm:$0xff] }
   0x6   :  { %394 = vmatprep.subr.bf16.mxu0 %v393_v5  ;;  %v409_v18 = vpack.c.bf16 %v29_v17, %v28_v16  ;;  %v413_v21 = vpack.c.bf16 %v31_v20, %v30_v19  ;;  %v32_v22 = vld [vmem:[%s563_s1 + $0x70] sm:$0xff]  ;;  %v33_v23 = vld [vmem:[%s563_s1 + $0x78] sm:$0xff]  ;;  %v15_v25 = vld [vmem:[%s564_s0 + $0x8] sm:$0xff]  ;;  %v447_v17 = vmov 16  }
   0x7   :  { %v417_v24 = vpack.c.bf16 %v33_v23, %v32_v22  ;;  %v16_v26 = vld [vmem:[%s564_s0 + $0x10] sm:$0xff]  ;;  %v17_v27 = vld [vmem:[%s564_s0 + $0x18] sm:$0xff]  ;;  %vm270_vm3 = vmand %vm268_vm1, %vm269_vm2  ;;  %436 = vset.pattern.permute.xlu0 %v447_v17 }
   0x8   :  { %v159_v16 = vld [vmem:[%s565_s2 + $0x8] sm:$0xff] }
   0x9   :  { %396 = vmatpush3.bf16.msra.mxu0 %v393_v5 }
   0xa   :  { %398 = vmatprep.subr.bf16.mxu0 %v397_v8 }
   0xd   :  { %400 = vmatpush3.bf16.msra.mxu0 %v397_v8 }
   0xe   :  { %402 = vmatprep.subr.bf16.mxu0 %v401_v12 }
  0x11   :  { %404 = vmatpush3.bf16.msra.mxu0 %v401_v12 }
  0x12   :  { %406 = vmatprep.subr.bf16.mxu0 %v405_v15 }
  0x15   :  { %408 = vmatpush3.bf16.msra.mxu0 %v405_v15  ;;  %v158_v15 = vld [vmem:[%s565_s2] sm:$0xff] }
  0x16   :  { %410 = vmatprep.subr.bf16.mxu0 %v409_v18  ;;  %386 = vmatprep.mubr.msk.f32.mxu1 %vm176_vm4, %v158_v15 }
  0x19   :  { %412 = vmatpush3.bf16.msra.mxu0 %v409_v18 }
  0x1a   :  { %414 = vmatprep.subr.bf16.mxu0 %v413_v21 }
  0x1d   :  { %416 = vmatpush3.bf16.msra.mxu0 %v413_v21 }
  0x1e   :  { %418 = vmatprep.subr.bf16.mxu0 %v417_v24 }
  0x21   :  { %420 = vmatpush3.bf16.msra.mxu0 %v417_v24 }
  0x24   :  { %377 = vmatmul.mubr.f32.vlgmr.msra.gmra.mrb[0].mxu0 %v15_v25 }
  0x25   :  { %379 = vmatprep.mubr.f32.mxu0 %v16_v26 }
  0x28   :  { %380 = vmatmul.mubr.f32.gmra.mrb[2].mxu0 %v17_v27 }
  0xf7   :  { %v378_v28 = vpop.f32.mrb[0].mxu0 }
  0xf8   :  { %v100_v29 = vpop.f32.mrb[1].mxu0  ;;  %v123_v30 = vsel %vm121_vm0, %v378_v28, inf  ;;  %v135_v31 = vsel %vm121_vm0, %v378_v28, -inf }
  0xf9   :  { %v122_v32 = vsel %vm121_vm0, %v100_v29, inf  ;;  %v134_v33 = vsel %vm121_vm0, %v100_v29, -inf }
  0xfa   :  { %v124_v34 = vmin.f32 %v122_v32, %v123_v30  ;;  %v136_v35 = vmax.f32 %v134_v33, %v135_v31 }
  0xfb   :  { %v530_v38 = vpop.f32.mrb[2].mxu0 }
  0xfc   :  { %125 = vmin.xlane.f32.xlu0 %v124_v34  ;;  %v532_v39 = vpop.f32.mrb[3].mxu0  ;;  %v272_v41 = vsel %vm270_vm3, %v530_v38, inf  ;;  %v284_v45 = vsel %vm270_vm3, %v530_v38, -inf }
  0xfd   :  { %v271_v40 = vsel %vm270_vm3, %v532_v39, inf  ;;  %v283_v44 = vsel %vm270_vm3, %v532_v39, -inf }
  0xfe   :  { %v273_v42 = vmin.f32 %v271_v40, %v272_v41  ;;  %v285_v46 = vmax.f32 %v283_v44, %v284_v45 }
 0x100   :  { %137 = vmax.xlane.f32.xlu0 %v136_v35 }
 0x104   :  { %274 = vmin.xlane.f32.xlu0 %v273_v42 }
 0x11a   :  { %259 = vperm.xlu0 %436, %v158_v15  }
 0x189   :  { %v126_v47 = vpop.xlane.xlu0 %125 }
 0x18a   :  { %v127_v48 = vrot.slane %v126_v47, 4 }
 0x18c   :  { %v128_v49 = vmin.f32 %v126_v47, %v127_v48 }
 0x18d   :  { %v138_v50 = vpop.xlane.xlu0 %137 }
 0x18e   :  { %v129_v51 = vrot.slane %v128_v49, 2  ;;  %v139_v52 = vrot.slane %v138_v50, 4 }
 0x190   :  { %v140_v53 = vmax.f32 %v138_v50, %v139_v52  ;;  %v130_v54 = vmin.f32 %v128_v49, %v129_v51 }
 0x191   :  { %v275_v61 = vpop.xlane.xlu0 %274 }
 0x192   :  { %v141_v55 = vrot.slane %v140_v53, 2  ;;  %v131_v56 = vrot.slane %v130_v54, 1  ;;  %v276_v62 = vrot.slane %v275_v61, 4 }
 0x194   :  { %v132_v57 = vmin.f32 %v130_v54, %v131_v56  ;;  %v142_v58 = vmax.f32 %v140_v53, %v141_v55  ;;  %v277_v63 = vmin.f32 %v275_v61, %v276_v62 }
 0x196   :  { %425 = vpush %v132_v57  ;;  %v143_v59 = vrot.slane %v142_v58, 1  ;;  %v278_v0 = vrot.slane %v277_v63, 2 }
 0x198   :  { %v144_v60 = vmax.f32 %v142_v58, %v143_v59  ;;  %v279_v1 = vmin.f32 %v277_v63, %v278_v0 }
 0x199   :  { %v260_v49 = vpop.permute.xlu0 %259 }
 0x19a   :  { %427 = vpush %v144_v60  ;;  %v280_v2 = vrot.slane %v279_v1, 1 }
 0x19c   :  { %v281_v3 = vmin.f32 %v279_v1, %v280_v2 }
 0x19e   :  { %429 = vpush %v281_v3 }
 0x1c7   :  { %s426_s0 = spop %425 }
 0x1c8   :  { %v146_v5 = vstv %s426_s0 }
 0x1c9   :  { %v147_v6 = vsub.f32 %v100_v29, %v146_v5  ;;  %v148_v7 = vsub.f32 %v378_v28, %v146_v5 }
 0x1cb   :  { %s428_s1 = spop %427 }
 0x1cc   :  { %s149_s25 = ssub.f32 %s428_s1, %s426_s0 }
 0x1ce   :  { %v150_v4 = vstv %s149_s25 }
 0x1cf   :  { %438 = vrcp.f32 %v150_v4  ;;  %s430_s2 = spop %429 }
 0x1d0   :  { %v295_v35 = vstv %s430_s2 }
 0x1d1   :  { %v296_v36 = vsub.f32 %v532_v39, %v295_v35  ;;  %v297_v40 = vsub.f32 %v530_v38, %v295_v35 }
 0x1d9   :  { %v439_v8 = vpop.eup %438 }
 0x1da   :  { %v152_v9 = vmul.f32 %v439_v8, %v147_v6  ;;  %v153_v10 = vmul.f32 %v439_v8, %v148_v7 }
 0x1dc   :  { %v154_v11 = vmul.f32 2.0, %v152_v9  ;;  %v155_v13 = vmul.f32 2.0, %v153_v10 }
 0x1de   :  { %v156_v12 = vadd.f32 9.0, %v154_v11  ;;  %v157_v14 = vadd.f32 9.0, %v155_v13 }
 0x1e0   :  { %162 = vperm.xlu1 %435, %v156_v12  }
 0x1e4   :  { %167 = vperm.xlu1 %435, %v157_v14  }
 0x1e8   :  { %437 = vset.pattern.permute.xlu1 %v447_v17 }
 0x208   :  { %286 = vmax.xlane.f32.xlu1 %v285_v46 }
 0x219   :  { %263 = vperm.xlu1 %437, %v159_v16  }
 0x25f   :  { %v163_v18 = vpop.permute.xlu1 %162 }
 0x260   :  { %v170_v19 = vadd.f32 1e-08, %v163_v18 }
 0x262   :  { %440 = vlog2.f32 %v170_v19 }
 0x263   :  { %v168_v20 = vpop.permute.xlu1 %167 }
 0x264   :  { %v171_v21 = vadd.f32 1e-08, %v168_v20 }
 0x266   :  { %442 = vlog2.f32 %v171_v21 }
 0x26c   :  { %v441_v22 = vpop.eup %440 }
 0x26d   :  { %v173_v24 = vmul.f32 0.6931472, %v441_v22 }
 0x270   :  { %v443_v23 = vpop.eup %442 }
 0x271   :  { %v175_v25 = vmul.f32 0.6931472, %v443_v23 }
 0x273   :  { %v421_v26 = vpack.c.bf16 %v175_v25, %v173_v24 }
 0x275   :  { %422 = vmatprep.subr.bf16.mxu1 %v421_v26 }
 0x276   :  { %424 = vmatpush3.bf16.msra.mxu1 %v421_v26 }
 0x279   :  { %387 = vmatmul.mubr.msk.f32.vlgmr.msra.gmra.mrb[0].mxu1 %vm176_vm4, %v159_v16 }
 0x295   :  { %v287_v27 = vpop.xlane.xlu1 %286 }
 0x296   :  { %v288_v28 = vrot.slane %v287_v27, 4 }
 0x298   :  { %v289_v29 = vmax.f32 %v287_v27, %v288_v28 }
 0x299   :  { %v264_v48 = vpop.permute.xlu1 %263 }
 0x29a   :  { %v290_v30 = vrot.slane %v289_v29, 2 }
 0x29c   :  { %v291_v31 = vmax.f32 %v289_v29, %v290_v30 }
 0x29e   :  { %v292_v32 = vrot.slane %v291_v31, 1 }
 0x2a0   :  { %v293_v33 = vmax.f32 %v291_v31, %v292_v32 }
 0x2a2   :  { %431 = vpush %v293_v33 }
 0x2d3   :  { %s432_s30 = spop %431 }
 0x2d4   :  { %s298_s4 = ssub.f32 %s432_s30, %s430_s2 }
 0x2d6   :  { %v299_v34 = vstv %s298_s4 }
 0x2d7   :  { %444 = vrcp.f32 %v299_v34 }
 0x2e1   :  { %v445_v41 = vpop.eup %444 }
 0x2e2   :  { %v301_v42 = vmul.f32 %v445_v41, %v296_v36  ;;  %v302_v43 = vmul.f32 %v445_v41, %v297_v40 }
 0x2e4   :  { %v303_v44 = vmul.f32 2.0, %v301_v42  ;;  %v304_v45 = vmul.f32 2.0, %v302_v43 }
 0x2e6   :  { %v305_v46 = vadd.f32 -1.0, %v303_v44  ;;  %v306_v47 = vadd.f32 -1.0, %v304_v45 }
 0x2e8   :  { %312 = vst [vmem:[%s566_s3 + $0x10] sm:$0xff] %v305_v46  ;;  %313 = vst [vmem:[%s566_s3 + $0x18] sm:$0xff] %v306_v47 }
 0x34c   :  { %v388_v39 = vpop.f32.mrb[0].mxu1 }
 0x34d   :  { %v267_v38 = vsub.f32 %v388_v39, %v264_v48  ;;  %v249_v50 = vpop.f32.mrb[1].mxu1 }
 0x34e   :  { %v266_v51 = vsub.f32 %v249_v50, %v260_v49 }
 0x34f   :  { %v309_v52 = vsel %vm307_vm5, %v267_v38, %v168_v20 }
 0x350   :  { %311 = vst [vmem:[%s566_s3 + $0x8] sm:$0xff] %v309_v52  ;;  %v308_v53 = vsel %vm307_vm5, %v266_v51, %v163_v18 }
 0x351   :  { %310 = vst [vmem:[%s566_s3] sm:$0xff] %v308_v53 }

</bundles_post_ra>
